<compile_context>
chip_gen: v6e
topology: v6e:2x2x1
jax: 0.10.0
libtpu: 0.0.40
codegen_flags: <defaults>
</compile_context>

<pallas_src>
import functools

import jax
import jax.numpy as jnp
from jax.experimental import pallas as pl
from jax.experimental.pallas import tpu as pltpu

_EPS = 1e-6                                # pairwise_distance default eps
_VMEM_DATA_BUDGET = 20 * 1024 * 1024       # conservative tile-data budget (v7x-safe)


def _term1_sum_kernel(x_ref, y_ref, w_ref, out_ref, acc_ref, *, n_valid, tile_n):
    """Accumulate sum over all valid rows of ||x @ W - y + eps||_2^2."""
    i = pl.program_id(0)

    @pl.when(i == 0)
    def _init():
        acc_ref[...] = jnp.zeros_like(acc_ref)

    # MXU matmul in the input dtype, f32 accumulation.
    z = jnp.dot(x_ref[...], w_ref[...], preferred_element_type=jnp.float32)
    diff = z - y_ref[...].astype(jnp.float32) + _EPS          # (tile_n, K) f32

    # Mask rows added when padding N up to a multiple of tile_n.
    row = jax.lax.broadcasted_iota(jnp.int32, diff.shape, 0) + i * tile_n
    diff = jnp.where(row < n_valid, diff, 0.0)

    # One whole-tile reduction per step (no (N,1) intermediate, no per-row div).
    acc_ref[...] += jnp.sum(diff * diff, keepdims=True)

    @pl.when(i == pl.num_programs(0) - 1)
    def _finalize():
        out_ref[...] = acc_ref[...]


def _choose_tile_n(n, d, k, itemsize):
    """Largest sublane-aligned row tile whose double-buffered x/y blocks plus
    the resident W block stay inside the conservative VMEM data budget."""
    w_bytes = 2 * d * k * itemsize                 # W block (resident, 2 bufs)
    per_row = 2 * (d + k) * itemsize               # double-buffered x + y rows
    avail = max(_VMEM_DATA_BUDGET - w_bytes, 8 * per_row)
    tile = int(avail // per_row)
    tile = max(8, min(tile, 2048))
    tile = (tile // 8) * 8                         # sublane aligned
    n_pad8 = ((n + 7) // 8) * 8
    return max(8, min(tile, n_pad8))


def loss_func(x, y, W, alpha, rho, *, tile_n=None):
    """Pallas TPU forward of LossFunc(f1=False, f2=False)."""
    n, d = x.shape
    k = y.shape[1]
    assert W.shape == (d, k)

    itemsize = max(jnp.dtype(x.dtype).itemsize,
                   jnp.dtype(y.dtype).itemsize,
                   jnp.dtype(W.dtype).itemsize)
    if tile_n is None:
        tile_n = _choose_tile_n(n, d, k, itemsize)
    tile_n = max(8, (int(tile_n) // 8) * 8)

    grid_n = pl.cdiv(n, tile_n)
    n_pad = grid_n * tile_n
    if n_pad != n:
        x = jnp.pad(x, ((0, n_pad - n), (0, 0)))
        y = jnp.pad(y, ((0, n_pad - n), (0, 0)))

    kernel = functools.partial(_term1_sum_kernel, n_valid=n, tile_n=tile_n)

    term1_sum = pl.pallas_call(
        kernel,
        out_shape=jax.ShapeDtypeStruct((1, 1), jnp.float32),
        grid_spec=pltpu.PrefetchScalarGridSpec(
            num_scalar_prefetch=0,
            grid=(grid_n,),
            in_specs=[
                pl.BlockSpec((tile_n, d), lambda i: (i, 0)),   # x tile (streamed)
                pl.BlockSpec((tile_n, k), lambda i: (i, 0)),   # y tile (streamed)
                pl.BlockSpec((d, k), lambda i: (0, 0)),        # W (resident)
            ],
            out_specs=pl.BlockSpec((1, 1), lambda i: (0, 0)),
            scratch_shapes=[pltpu.VMEM((1, 1), jnp.float32)],  # running sum
        ),
        compiler_params=pltpu.CompilerParams(
            dimension_semantics=("arbitrary",),                # reduction axis
            vmem_limit_bytes=32 * 1024 * 1024,
        ),
    )(x, y, W)[0, 0]

    # Elastic-net penalty: O(D*K), computed exactly once (hoisted out of the
    # streaming loop), plus the final mean scaling as a precomputed multiply.
    w32 = W.astype(jnp.float32)
    term2 = (alpha * rho * jnp.sum(jnp.abs(w32))
             + alpha * (1.0 - rho) * 0.5 * jnp.sum(w32 * w32))
    inv_alpha_n = 1.0 / (alpha * n)
    return term1_sum * inv_alpha_n + term2


def _loss_ref(x, y, W, alpha, rho):
    """Plain-JAX reference mirroring the PyTorch semantics."""
    z = x.astype(jnp.float32) @ W.astype(jnp.float32)
    d2 = jnp.sum((z - y.astype(jnp.float32) + _EPS) ** 2, axis=-1)  # dist**2
    term1 = d2 / alpha
    w32 = W.astype(jnp.float32)
    term2 = (alpha * rho * jnp.sum(jnp.abs(w32))
             + alpha * (1.0 - rho) * 0.5 * jnp.sum(w32 * w32))
    return jnp.mean(term1 + term2)


if __name__ == "__main__":
    key = jax.random.PRNGKey(0)
    kx, ky, kw = jax.random.split(key, 3)

    # Small shapes; N is deliberately not a multiple of the tile so both the
    # multi-step accumulator path and the row masking get exercised.
    N, D, K = 300, 64, 32
    x = jax.random.normal(kx, (N, D), dtype=jnp.float32)
    y = jax.random.normal(ky, (N, K), dtype=jnp.float32)
    W = jax.random.normal(kw, (D, K), dtype=jnp.float32) * 0.1
    alpha, rho = 0.5, 0.3

    ref = jax.block_until_ready(_loss_ref(x, y, W, alpha, rho))

    # Multi-block grid (3 x 128-row tiles, last partially masked).
    loss_grid = jax.block_until_ready(loss_func(x, y, W, alpha, rho, tile_n=128))
    assert jnp.allclose(loss_grid, ref, rtol=1e-4, atol=1e-4), (loss_grid, ref)

    # Auto-sized tile (single large block).
    loss_auto = jax.block_until_ready(loss_func(x, y, W, alpha, rho))
    assert jnp.allclose(loss_auto, ref, rtol=1e-4, atol=1e-4), (loss_auto, ref)

    print("KERNEL_OK")
</pallas_src>

<mosaic_0001>
module attributes {stable_mosaic.version = 11 : i64} {
  func.func @_term1_sum_kernel(%arg0: i32, %arg1: memref<128x64xf32, #tpu.memory_space<vmem>>, %arg2: memref<128x32xf32, #tpu.memory_space<vmem>>, %arg3: memref<64x32xf32, #tpu.memory_space<vmem>>, %arg4: memref<1x1xf32, #tpu.memory_space<vmem>>, %arg5: memref<1x1xf32, #tpu.memory_space<vmem>>) attributes {dimension_semantics = [#tpu.dimension_semantics<arbitrary>], iteration_bounds = array<i64: 3>, scalar_prefetch = 0 : i64, scratch_operands = 1 : i64, tpu.core_type = #tpu.core_type<tc>, window_params = [{transform_indices = @transform_0, window_bounds = array<i64: 128, 64>}, {transform_indices = @transform_1, window_bounds = array<i64: 128, 32>}, {pipeline_mode = #tpu.pipeline_mode<synchronous>, transform_indices = @transform_2, window_bounds = array<i64: 64, 32>}, {pipeline_mode = #tpu.pipeline_mode<synchronous>, transform_indices = @transform_3, window_bounds = array<i64: 1, 1>}]} {
    %c0_i32 = arith.constant 0 : i32
    %0 = arith.cmpi eq, %arg0, %c0_i32 : i32
    %1 = arith.extui %0 : i1 to i32
    %c0_i32_0 = arith.constant 0 : i32
    %2 = arith.cmpi ne, %1, %c0_i32_0 : i32
    scf.if %2 {
      %cst_14 = arith.constant 0.000000e+00 : f32
      %30 = vector.broadcast %cst_14 : f32 to vector<1x1xf32>
      %c0_15 = arith.constant 0 : index
      %c0_16 = arith.constant 0 : index
      %31 = vector.load %arg5[%c0_15, %c0_16] : memref<1x1xf32, #tpu.memory_space<vmem>>, vector<1x1xf32>
      tpu.vector_store %arg5[%c0_15, %c0_16], %30 {strides = array<i32>} : memref<1x1xf32, #tpu.memory_space<vmem>>, vector<1x1xf32>,
    } else {
    }
    %c0 = arith.constant 0 : index
    %c0_1 = arith.constant 0 : index
    %3 = vector.load %arg1[%c0, %c0_1] : memref<128x64xf32, #tpu.memory_space<vmem>>, vector<128x64xf32>
    %c0_2 = arith.constant 0 : index
    %c0_3 = arith.constant 0 : index
    %4 = vector.load %arg3[%c0_2, %c0_3] : memref<64x32xf32, #tpu.memory_space<vmem>>, vector<64x32xf32>
    %cst = arith.constant dense<0.000000e+00> : vector<128x32xf32>
    %5 = tpu.matmul %3, %4, %cst {dimension_numbers = #tpu.dot_dimension_numbers<[1], [0], [0], [1], [0, 0, 1, 1], [], []>} : vector<128x64xf32>, vector<64x32xf32>, vector<128x32xf32> -> vector<128x32xf32>
    %c0_4 = arith.constant 0 : index
    %c0_5 = arith.constant 0 : index
    %6 = vector.load %arg2[%c0_4, %c0_5] : memref<128x32xf32, #tpu.memory_space<vmem>>, vector<128x32xf32>
    %7 = arith.subf %5, %6 : vector<128x32xf32>
    %cst_6 = arith.constant 9.99999997E-7 : f32
    %8 = vector.broadcast %cst_6 : f32 to vector<128x32xf32>
    %9 = arith.addf %7, %8 : vector<128x32xf32>
    %10 = tpu.iota {dimensions = array<i32: 0>} : vector<128x32xi32>
    %c128_i32 = arith.constant 128 : i32
    %11 = arith.muli %arg0, %c128_i32 : i32
    %12 = vector.broadcast %11 : i32 to vector<128x32xi32>
    %13 = arith.addi %10, %12 : vector<128x32xi32>
    %c300_i32 = arith.constant 300 : i32
    %14 = vector.broadcast %c300_i32 : i32 to vector<128x32xi32>
    %15 = arith.cmpi slt, %13, %14 : vector<128x32xi32>
    %cst_7 = arith.constant 0.000000e+00 : f32
    %16 = vector.broadcast %cst_7 : f32 to vector<128x32xf32>
    %17 = arith.select %15, %9, %16 : vector<128x32xi1>, vector<128x32xf32>
    %c0_8 = arith.constant 0 : index
    %c0_9 = arith.constant 0 : index
    %18 = vector.load %arg5[%c0_8, %c0_9] : memref<1x1xf32, #tpu.memory_space<vmem>>, vector<1x1xf32>
    %19 = arith.mulf %17, %17 : vector<128x32xf32>
    %20 = vector.shape_cast %19 : vector<128x32xf32> to vector<1x128x32xf32>
    %cst_10 = arith.constant dense<0.000000e+00> : vector<1xf32>
    %21 = vector.multi_reduction <add>, %20, %cst_10 [1, 2] : vector<1x128x32xf32> to vector<1xf32>
    %22 = vector.shape_cast %21 : vector<1xf32> to vector<1x1x1xf32>
    %23 = vector.extract %22[0, 0, 0] : f32 from vector<1x1x1xf32>
    %24 = vector.broadcast %23 : f32 to vector<1x1xf32>
    %25 = arith.addf %18, %24 : vector<1x1xf32>
    %c0_11 = arith.constant 0 : index
    %c0_12 = arith.constant 0 : index
    %26 = vector.load %arg5[%c0_11, %c0_12] : memref<1x1xf32, #tpu.memory_space<vmem>>, vector<1x1xf32>
    tpu.vector_store %arg5[%c0_11, %c0_12], %25 {strides = array<i32>} : memref<1x1xf32, #tpu.memory_space<vmem>>, vector<1x1xf32>,
    %c2_i32 = arith.constant 2 : i32
    %27 = arith.cmpi eq, %arg0, %c2_i32 : i32
    %28 = arith.extui %27 : i1 to i32
    %c0_i32_13 = arith.constant 0 : i32
    %29 = arith.cmpi ne, %28, %c0_i32_13 : i32
    scf.if %29 {
      %c0_14 = arith.constant 0 : index
      %c0_15 = arith.constant 0 : index
      %30 = vector.load %arg5[%c0_14, %c0_15] : memref<1x1xf32, #tpu.memory_space<vmem>>, vector<1x1xf32>
      %c0_16 = arith.constant 0 : index
      %c0_17 = arith.constant 0 : index
      %31 = vector.load %arg4[%c0_16, %c0_17] : memref<1x1xf32, #tpu.memory_space<vmem>>, vector<1x1xf32>
      tpu.vector_store %arg4[%c0_16, %c0_17], %30 {strides = array<i32>} : memref<1x1xf32, #tpu.memory_space<vmem>>, vector<1x1xf32>,
    } else {
    }
    return
  }
  func.func @transform_0(%arg0: i32) -> (i32, i32) {
    %c0_i32 = arith.constant 0 : i32
    %c0_i32_0 = arith.constant 0 : i32
    return %arg0, %c0_i32 : i32, i32
  }
  func.func @transform_1(%arg0: i32) -> (i32, i32) {
    %c0_i32 = arith.constant 0 : i32
    %c0_i32_0 = arith.constant 0 : i32
    return %arg0, %c0_i32 : i32, i32
  }
  func.func @transform_2(%arg0: i32) -> (i32, i32) {
    %c0_i32 = arith.constant 0 : i32
    %c0_i32_0 = arith.constant 0 : i32
    %c0_i32_1 = arith.constant 0 : i32
    return %c0_i32, %c0_i32_0 : i32, i32
  }
  func.func @transform_3(%arg0: i32) -> (i32, i32) {
    %c0_i32 = arith.constant 0 : i32
    %c0_i32_0 = arith.constant 0 : i32
    %c0_i32_1 = arith.constant 0 : i32
    return %c0_i32, %c0_i32_0 : i32, i32
  }
}

</mosaic_0001>

<bundles_post_ra>
// kernel: tpu_custom_call.1
= control target key start
LH: loop header
LB: loop body
LE: loop exit
PB: predicated region body
PF: predicated region fallthrough
CT: control target
= control target key end

     0   :  { %8 = vsyncpa [#allocation4], 0  ;;  %s833_s12 = smov 0   ;;  %s1049_s0 = inlined_call_operand.vmem [shape: f32[384,64], index: 0, kind: input, shape index: {}]   ;;  %s1050_s1 = inlined_call_operand.vmem [shape: f32[384,32], index: 1, kind: input, shape index: {}]   ;;  %s1051_s2 = inlined_call_operand.vmem [shape: f32[64,32], index: 2, kind: input, shape index: {}]   ;;  %s1052_s3 = inlined_call_operand.hbm [shape: f32[1,1], index: 3, kind: output, shape index: {}]  }
   0x1 LB: > { %s839_s13 = sadd.s32 4294967295, %s809_s12   ;;  %p649_p0 = scmp.ge.s32.totalorder %s809_s12, 1  ;;  %s809_s12 = sphi %s833_s12, %s14_s12  }
   0x2   : > { %p145_p1 = scmp.lt.s32.totalorder %s809_s12, 4 }
   0x4   : > { %p146_p2 = pnand %p649_p0, %p145_p1 }
   0x5   : > { %s650_s14 = sshll.u32 (!%p146_p2), %s839_s13, 4  ;;  %p654_p4 = scmp.ne.s32.totalorder (!%p146_p2), %s839_s13, 0 }
   0x6   : > { %149 = sbr.rel (%p146_p2) target bundleno = 497 (0x1f1), region = 32  ;;  %p170_p3 = scmp.lt.s32.totalorder (!%p146_p2), %s650_s14, 47 }
   0xb   : > { %s1054_s14 = smov (!%p170_p3, %s650_s14), 47  ;;  %184 = sbr.rel (%p654_p4) target bundleno = 18 (0x12), region = 36 }
   0xc   : > { %s651_s15 = sshll.u32 %s1054_s14, 3 }
   0xd   : > { %s847_s18 = scalar_lea.vmem %s1049_s0, %s651_s15  ;;  %s852_s21 = scalar_lea.vmem %s1050_s1, %s651_s15 }
  0x10   : > { %vm185_vm0 = vcmask 0   ;;  %v811_v0 = vmov 0.0  }
  0x11   : > { %186 = vst.msk [vmem:[#allocation2] sm:$0x1] %vm185_vm0, %v811_v0 }
  0x12 PF: > { %v210_v1 = vld [vmem:[%s1051_s2 + $0x38] sm:$0xff]  ;;  %v209_v2 = vld [vmem:[%s1051_s2 + $0x30] sm:$0xff]  ;;  %vm211_vm1 = vcmask 523264   ;;  %v208_v3 = vld [vmem:[%s1051_s2 + $0x28] sm:$0xff]  ;;  %v453_v25 = vlaneseq  ;;  %s671_s11 = sshll.u32 %s839_s13, 7  ;;  %vm537_vm3 = vcmask 261120  }
  0x13   : > { %701 = vmatprep.subr.mxu0 %v210_v1  ;;  %741 = vmatprep.subr.mxu1 %v210_v1  ;;  %v187_v4 = vld [vmem:[%s847_s18] sm:$0xff]  ;;  %v206_v6 = vld [vmem:[%s1051_s2 + $0x18] sm:$0xff]  ;;  %v205_v7 = vld [vmem:[%s1051_s2 + $0x10] sm:$0xff]  ;;  %v915_v28 = vstv %s671_s11  ;;  %p672_p5 = scmp.ne.s32.totalorder %s839_s13, 2 }
  0x14   : > { %702 = vmatpush3.msra.mxu0 %v210_v1  ;;  %749 = vmatpush3.msra.mxu1 %v210_v1  ;;  %v207_v5 = vld [vmem:[%s1051_s2 + $0x20] sm:$0xff]  ;;  %v204_v8 = vld [vmem:[%s1051_s2 + $0x8] sm:$0xff]  ;;  %v189_v11 = vld [vmem:[%s847_s18 + $0x10] sm:$0xff]  ;;  %v911_v26 = vshrl.u32 %v453_v25, 7 }
  0x15   : > { %703 = vmatprep.subr.mxu0 %v209_v2  ;;  %717 = vmatprep.mubr.msk.f32.mxu0 %vm211_vm1, %v187_v4  ;;  %v203_v9 = vld [vmem:[%s1051_s2] sm:$0xff]  ;;  %v188_v10 = vld [vmem:[%s847_s18 + $0x8] sm:$0xff]  ;;  %v197_v14 = vld [vmem:[%s847_s18 + $0x50] sm:$0xff] }
  0x16   : > { %704 = vmatpush3.msra.mxu0 %v209_v2  ;;  %742 = vmatprep.subr.mxu1 %v209_v2  ;;  %v195_v12 = vld [vmem:[%s847_s18 + $0x40] sm:$0xff]  ;;  %v196_v13 = vld [vmem:[%s847_s18 + $0x48] sm:$0xff]  ;;  %v190_v15 = vld [vmem:[%s847_s18 + $0x18] sm:$0xff]  ;;  %v455_v27 = vadd.s32 8, %v911_v26  ;;  %v457_v29 = vadd.s32 24, %v911_v26  ;;  %v456_v30 = vadd.s32 16, %v911_v26  ;;  %v472_v35 = vadd.s32 %v915_v28, %v911_v26 }
  0x17   : > { %705 = vmatprep.subr.mxu0 %v208_v3  ;;  %750 = vmatpush3.msra.mxu1 %v209_v2  ;;  %v191_v16 = vld [vmem:[%s847_s18 + $0x20] sm:$0xff]  ;;  %v198_v17 = vld [vmem:[%s847_s18 + $0x58] sm:$0xff]  ;;  %v192_v19 = vld [vmem:[%s847_s18 + $0x28] sm:$0xff]  ;;  %v459_v33 = vadd.s32 40, %v911_v26  ;;  %v458_v34 = vadd.s32 32, %v911_v26  ;;  %v461_v40 = vadd.s32 56, %v911_v26 }
  0x18   : > { %706 = vmatpush3.msra.mxu0 %v208_v3  ;;  %743 = vmatprep.subr.mxu1 %v208_v3  ;;  %v199_v18 = vld [vmem:[%s847_s18 + $0x60] sm:$0xff]  ;;  %v193_v20 = vld [vmem:[%s847_s18 + $0x30] sm:$0xff]  ;;  %v200_v21 = vld [vmem:[%s847_s18 + $0x68] sm:$0xff]  ;;  %v473_v31 = vadd.s32 %v915_v28, %v455_v27  ;;  %v475_v38 = vadd.s32 %v915_v28, %v457_v29  ;;  %v474_v39 = vadd.s32 %v915_v28, %v456_v30  ;;  %v460_v42 = vadd.s32 48, %v911_v26 }
  0x19   : > { %707 = vmatprep.subr.mxu0 %v207_v5  ;;  %751 = vmatpush3.msra.mxu1 %v208_v3  ;;  %v201_v22 = vld [vmem:[%s847_s18 + $0x70] sm:$0xff]  ;;  %v194_v23 = vld [vmem:[%s847_s18 + $0x38] sm:$0xff]  ;;  %v406_v32 = vld [vmem:[%s852_s21 + $0x8] sm:$0xff]  ;;  %v932_v45 = vadd.s32 %v915_v28, %v459_v33  ;;  %v935_v46 = vadd.s32 %v915_v28, %v458_v34  ;;  %v463_v48 = vadd.s32 72, %v911_v26  ;;  %vm488_vm4 = vcmp.lt.s32.totalorder %v472_v35, 300 }
  0x1a   : > { %708 = vmatpush3.msra.mxu0 %v207_v5  ;;  %744 = vmatprep.subr.mxu1 %v207_v5  ;;  %v202_v24 = vld [vmem:[%s847_s18 + $0x78] sm:$0xff]  ;;  %v405_v37 = vld [vmem:[%s852_s21] sm:$0xff]  ;;  %vm489_vm2 = vcmp.lt.s32.totalorder %v473_v31, 300  ;;  %v462_v51 = vadd.s32 64, %v911_v26  ;;  %vm491_vm5 = vcmp.lt.s32.totalorder %v475_v38, 300  ;;  %v407_v53 = vld [vmem:[%s852_s21 + $0x10] sm:$0xff]  ;;  %v943_v54 = vadd.s32 %v915_v28, %v461_v40 }
  0x1b   : > { %709 = vmatprep.subr.mxu0 %v206_v6  ;;  %752 = vmatpush3.msra.mxu1 %v207_v5  ;;  %v408_v44 = vld [vmem:[%s852_s21 + $0x18] sm:$0xff]  ;;  %vm490_vm6 = vcmp.lt.s32.totalorder %v474_v39, 300  ;;  %v464_v56 = vadd.s32 80, %v911_v26  ;;  %v948_v60 = vadd.s32 %v915_v28, %v460_v42  ;;  %v410_v62 = vld [vmem:[%s852_s21 + $0x28] sm:$0xff]  ;;  %vm493_vm7 = vcmp.lt.s32.totalorder %v932_v45, 300  ;;  %v413_v5 = vld [vmem:[%s852_s21 + $0x40] sm:$0xff] }
  0x1c   : > { %710 = vmatpush3.msra.mxu0 %v206_v6  ;;  %745 = vmatprep.subr.mxu1 %v206_v6  ;;  %vm492_vm8 = vcmp.lt.s32.totalorder %v935_v46, 300  ;;  %v954_v63 = vadd.s32 %v915_v28, %v463_v48  ;;  %v465_v1 = vadd.s32 88, %v911_v26  ;;  %vm495_vm9 = vcmp.lt.s32.totalorder %v943_v54, 300  ;;  %v415_v27 = vld [vmem:[%s852_s21 + $0x50] sm:$0xff] }
  0x1d   : > { %711 = vmatprep.subr.mxu0 %v205_v7  ;;  %753 = vmatpush3.msra.mxu1 %v206_v6  ;;  %v962_v6 = vadd.s32 %v915_v28, %v462_v51  ;;  %vm494_vm10 = vcmp.lt.s32.totalorder %v948_v60, 300  ;;  %v411_v33 = vld [vmem:[%s852_s21 + $0x30] sm:$0xff] }
  0x1e   : > { %712 = vmatpush3.msra.mxu0 %v205_v7  ;;  %746 = vmatprep.subr.mxu1 %v205_v7  ;;  %vm497_vm11 = vcmp.lt.s32.totalorder %v954_v63, 300 }
  0x1f   : > { %713 = vmatprep.subr.mxu0 %v204_v8  ;;  %754 = vmatpush3.msra.mxu1 %v205_v7  ;;  %vm496_vm12 = vcmp.lt.s32.totalorder %v962_v6, 300 }
  0x20   : > { %714 = vmatpush3.msra.mxu0 %v204_v8  ;;  %747 = vmatprep.subr.mxu1 %v204_v8 }
  0x21   : > { %715 = vmatprep.subr.mxu0 %v203_v9  ;;  %755 = vmatpush3.msra.mxu1 %v204_v8 }
  0x22   : > { %716 = vmatpush3.msra.mxu0 %v203_v9  ;;  %748 = vmatprep.subr.mxu1 %v203_v9 }
  0x23   : > { %718 = vmatmul.mubr.msk.f32.vlgmr.msra.gmra.mxu0 %vm211_vm1, %v188_v10  ;;  %756 = vmatpush3.msra.mxu1 %v203_v9  ;;  %v409_v10 = vld [vmem:[%s852_s21 + $0x20] sm:$0xff] }
  0x24   : > { %720 = vmatprep.mubr.msk.f32.mxu0 %vm211_vm1, %v189_v11  ;;  %729 = vmatprep.mubr.msk.f32.mxu1 %vm211_vm1, %v195_v12  ;;  %v967_v12 = vadd.s32 %v915_v28, %v464_v56 }
  0x25   : > { %730 = vmatmul.mubr.msk.f32.vlgmr.msra.gmra.mxu1 %vm211_vm1, %v196_v13 }
  0x26   : > { %732 = vmatprep.mubr.msk.f32.mxu1 %vm211_vm1, %v197_v14  ;;  %vm498_vm13 = vcmp.lt.s32.totalorder %v967_v12, 300 }
  0x27   : > { %721 = vmatmul.mubr.msk.f32.gmra.mxu0 %vm211_vm1, %v190_v15 }
  0x28   : > { %723 = vmatprep.mubr.msk.f32.mxu0 %vm211_vm1, %v191_v16  ;;  %v414_v16 = vld [vmem:[%s852_s21 + $0x48] sm:$0xff] }
  0x29   : > { %733 = vmatmul.mubr.msk.f32.gmra.mxu1 %vm211_vm1, %v198_v17 }
  0x2a   : > { %735 = vmatprep.mubr.msk.f32.mxu1 %vm211_vm1, %v199_v18 }
  0x2b   : > { %724 = vmatmul.mubr.msk.f32.gmra.mxu0 %vm211_vm1, %v192_v19  ;;  %v412_v19 = vld [vmem:[%s852_s21 + $0x38] sm:$0xff] }
  0x2c   : > { %726 = vmatprep.mubr.msk.f32.mxu0 %vm211_vm1, %v193_v20 }
  0x2d   : > { %736 = vmatmul.mubr.msk.f32.gmra.mxu1 %vm211_vm1, %v200_v21  ;;  %v976_v21 = vadd.s32 %v915_v28, %v465_v1  ;;  %v418_v1 = vld [vmem:[%s852_s21 + $0x68] sm:$0xff] }
  0x2e   : > { %738 = vmatprep.mubr.msk.f32.mxu1 %vm211_vm1, %v201_v22 }
  0x2f   : > { %727 = vmatmul.mubr.msk.f32.gmra.mxu0 %vm211_vm1, %v194_v23  ;;  %vm499_vm14 = vcmp.lt.s32.totalorder %v976_v21, 300 }
  0x31   : > { %739 = vmatmul.mubr.msk.f32.gmra.mxu1 %vm211_vm1, %v202_v24 }
  0xe3   : > { %v719_v36 = vpop.f32.mrf.mxu0 }
  0xe4   : > { %v422_v41 = vsub.f32 %v719_v36, %v406_v32 }
  0xe5   : > { %v326_v43 = vpop.f32.mrf.mxu0  ;;  %v937_v47 = vpop.f32.mrf.mxu1 }
  0xe6   : > { %v438_v49 = vadd.f32 1e-06, %v422_v41  ;;  %v421_v50 = vsub.f32 %v326_v43, %v405_v37  ;;  %v430_v34 = vsub.f32 %v937_v47, %v414_v16  ;;  %v416_v43 = vld [vmem:[%s852_s21 + $0x58] sm:$0xff]  ;;  %v466_v47 = vadd.s32 96, %v911_v26 }
  0xe7   : > { %v722_v52 = vpop.f32.mrf.mxu0  ;;  %v366_v55 = vpop.f32.mrf.mxu1 }
  0xe8   : > { %v505_v57 = vsel %vm489_vm2, %v438_v49, 0.0  ;;  %v437_v58 = vadd.f32 1e-06, %v421_v50  ;;  %v424_v59 = vsub.f32 %v722_v52, %v408_v44  ;;  %v429_v20 = vsub.f32 %v366_v55, %v413_v5 }
  0xe9   : > { %v336_v61 = vpop.f32.mrf.mxu0  ;;  %v956_v0 = vpop.f32.mrf.mxu1  ;;  %v522_v7 = vmul.f32 %v505_v57, %v505_v57  ;;  %v446_v55 = vadd.f32 1e-06, %v430_v34 }
  0xea   : > { %v504_v2 = vsel %vm488_vm4, %v437_v58, 0.0  ;;  %v440_v3 = vadd.f32 1e-06, %v424_v59  ;;  %v423_v4 = vsub.f32 %v336_v61, %v407_v53  ;;  %v445_v42 = vadd.f32 1e-06, %v429_v20  ;;  %v420_v20 = vld [vmem:[%s852_s21 + $0x78] sm:$0xff] }
  0xeb   : > { %v521_v8 = vmul.f32 %v504_v2, %v504_v2  ;;  %v725_v9 = vpop.f32.mrf.mxu0  ;;  %v376_v11 = vpop.f32.mrf.mxu1  ;;  %v539_v29 = vsel %vm537_vm3, %v522_v7, 0.0  ;;  %v432_v61 = vsub.f32 %v956_v0, %v416_v43  ;;  %v467_v2 = vadd.s32 104, %v911_v26 }
  0xec   : > { %v507_v13 = vsel %vm491_vm5, %v440_v3, 0.0  ;;  %v439_v14 = vadd.f32 1e-06, %v423_v4  ;;  %v426_v15 = vsub.f32 %v725_v9, %v410_v62  ;;  %v431_v44 = vsub.f32 %v376_v11, %v415_v27  ;;  %v417_v62 = vld [vmem:[%s852_s21 + $0x60] sm:$0xff] }
  0xed   : > { %v538_v17 = vsel %vm537_vm3, %v521_v8, 0.0  ;;  %v346_v18 = vpop.f32.mrf.mxu0  ;;  %v978_v22 = vpop.f32.mrf.mxu1  ;;  %v524_v30 = vmul.f32 %v507_v13, %v507_v13  ;;  %v484_v3 = vadd.s32 %v915_v28, %v466_v47  ;;  %v468_v4 = vadd.s32 112, %v911_v26 }
  0xee   : > { %v506_v23 = vsel %vm490_vm6, %v439_v14, 0.0  ;;  %v442_v24 = vadd.f32 1e-06, %v426_v15  ;;  %v425_v25 = vsub.f32 %v346_v18, %v409_v10  ;;  %v540_v36 = vadd.f32 %v539_v29, %v538_v17  ;;  %v419_v14 = vld [vmem:[%s852_s21 + $0x70] sm:$0xff] }
  0xef   : > { %v523_v31 = vmul.f32 %v506_v23, %v506_v23  ;;  %v728_v32 = vpop.f32.mrf.mxu0  ;;  %v386_v35 = vpop.f32.mrf.mxu1  ;;  %v543_v51 = vsel %vm537_vm3, %v524_v30, 0.0  ;;  %v512_v54 = vsel %vm496_vm12, %v445_v42, 0.0  ;;  %v447_v0 = vadd.f32 1e-06, %v431_v44 }
  0xf0   : > { %v509_v37 = vsel %vm493_vm7, %v442_v24, 0.0  ;;  %v441_v38 = vadd.f32 1e-06, %v425_v25  ;;  %v428_v39 = vsub.f32 %v728_v32, %v412_v19  ;;  %v433_v11 = vsub.f32 %v386_v35, %v417_v62 }
  0xf1   : > { %v541_v40 = vsel %vm537_vm3, %v523_v31, 0.0  ;;  %v356_v41 = vpop.f32.mrf.mxu0  ;;  %v526_v52 = vmul.f32 %v509_v37, %v509_v37  ;;  %v740_v56 = vpop.f32.mrf.mxu1  ;;  %v513_v16 = vsel %vm497_vm11, %v446_v55, 0.0  ;;  %v448_v17 = vadd.f32 1e-06, %v432_v61 }
  0xf2   : > { %v542_v48 = vadd.f32 %v541_v40, %v540_v36  ;;  %v508_v49 = vsel %vm492_vm8, %v441_v38, 0.0  ;;  %v444_v45 = vadd.f32 1e-06, %v428_v39  ;;  %v427_v50 = vsub.f32 %v356_v41, %v411_v33 }
  0xf3   : > { %v525_v53 = vmul.f32 %v508_v49, %v508_v49  ;;  %v547_v8 = vsel %vm537_vm3, %v526_v52, 0.0  ;;  %v396_v13 = vpop.f32.mrf.mxu1  ;;  %v434_v60 = vsub.f32 %v978_v22, %v418_v1  ;;  %v529_v6 = vmul.f32 %v512_v54, %v512_v54  ;;  %v520_v54 = vld [vmem:[#allocation2] sm:$0x1] }
  0xf4   : > { %v544_v57 = vadd.f32 %v543_v51, %v542_v48  ;;  %v511_v58 = vsel %vm495_vm9, %v444_v45, 0.0  ;;  %v443_v59 = vadd.f32 1e-06, %v427_v50  ;;  %v485_v19 = vadd.s32 %v915_v28, %v467_v2 }
  0xf5   : > { %v545_v46 = vsel %vm537_vm3, %v525_v53, 0.0  ;;  %v528_v9 = vmul.f32 %v511_v58, %v511_v58  ;;  %v469_v23 = vadd.s32 120, %v911_v26  ;;  %v514_v25 = vsel %vm498_vm13, %v447_v0, 0.0 }
  0xf6   : > { %v546_v5 = vadd.f32 %v545_v46, %v544_v57  ;;  %v510_v7 = vsel %vm494_vm10, %v443_v59, 0.0  ;;  %v449_v27 = vadd.f32 1e-06, %v433_v11  ;;  %v435_v29 = vsub.f32 %v396_v13, %v419_v14 }
  0xf7   : > { %v527_v10 = vmul.f32 %v510_v7, %v510_v7  ;;  %v551_v63 = vsel %vm537_vm3, %v528_v9, 0.0  ;;  %v530_v30 = vmul.f32 %v513_v16, %v513_v16  ;;  %vm500_vm15 = vcmp.lt.s32.totalorder %v484_v3, 300 }
  0xf8   : > { %v548_v15 = vadd.f32 %v547_v8, %v546_v5  ;;  %v486_v22 = vadd.s32 %v915_v28, %v468_v4  ;;  %v515_v32 = vsel %vm499_vm14, %v448_v17, 0.0  ;;  %v450_v33 = vadd.f32 1e-06, %v434_v60 }
  0xf9   : > { %v549_v18 = vsel %vm537_vm3, %v527_v10, 0.0  ;;  %v436_v34 = vsub.f32 %v740_v56, %v420_v20  ;;  %v553_v26 = vsel %vm537_vm3, %v529_v6, 0.0  ;;  %v531_v35 = vmul.f32 %v514_v25, %v514_v25 }
  0xfa   : > { %v550_v24 = vadd.f32 %v549_v18, %v548_v15  ;;  %vm501_vm0 = vcmp.lt.s32.totalorder %v485_v19, 300  ;;  %v487_v12 = vadd.s32 %v915_v28, %v469_v23  ;;  %v516_v37 = vsel %vm500_vm15, %v449_v27, 0.0 }
  0xfb   : > { %v451_v38 = vadd.f32 1e-06, %v435_v29  ;;  %v555_v39 = vsel %vm537_vm3, %v530_v30, 0.0  ;;  %v532_v40 = vmul.f32 %v515_v32, %v515_v32  ;;  %vm502_vm1 = vcmp.lt.s32.totalorder %v486_v22, 300 }
  0xfc   : > { %v552_v31 = vadd.f32 %v551_v63, %v550_v24  ;;  %v517_v42 = vsel %vm501_vm0, %v450_v33, 0.0  ;;  %v452_v43 = vadd.f32 1e-06, %v436_v34  ;;  %v557_v21 = vsel %vm537_vm3, %v531_v35, 0.0 }
  0xfd   : > { %v533_v44 = vmul.f32 %v516_v37, %v516_v37  ;;  %vm503_vm2 = vcmp.lt.s32.totalorder %v487_v12, 300  ;;  %v518_v48 = vsel %vm502_vm1, %v451_v38, 0.0  ;;  %v559_v49 = vsel %vm537_vm3, %v532_v40, 0.0 }
  0xfe   : > { %v554_v36 = vadd.f32 %v553_v26, %v552_v31  ;;  %v534_v45 = vmul.f32 %v517_v42, %v517_v42  ;;  %v519_v28 = vsel %vm503_vm2, %v452_v43, 0.0  ;;  %v535_v52 = vmul.f32 %v518_v48, %v518_v48 }
  0xff   : > { %v561_v51 = vsel %vm537_vm3, %v533_v44, 0.0  ;;  %v536_v55 = vmul.f32 %v519_v28, %v519_v28  ;;  %vm580_vm4 = vcmask 0  }
 0x100   : > { %v556_v41 = vadd.f32 %v555_v39, %v554_v36  ;;  %v563_v56 = vsel %vm537_vm3, %v534_v45, 0.0  ;;  %v565_v58 = vsel %vm537_vm3, %v535_v52, 0.0 }
 0x101   : > { %v567_v61 = vsel %vm537_vm3, %v536_v55, 0.0 }
 0x102   : > { %v558_v47 = vadd.f32 %v557_v21, %v556_v41 }
 0x104   : > { %v560_v50 = vadd.f32 %v559_v49, %v558_v47 }
 0x106   : > { %v562_v53 = vadd.f32 %v561_v51, %v560_v50 }
 0x108   : > { %v564_v57 = vadd.f32 %v563_v56, %v562_v53 }
 0x10a   : > { %v566_v59 = vadd.f32 %v565_v58, %v564_v57 }
 0x10c   : > { %v568_v62 = vadd.f32 %v567_v61, %v566_v59 }
 0x10e   : > { %569 = vadd.xlane.f32.xlu0 %v568_v62 }
 0x197   : > { %v570_v46 = vpop.xlane.xlu0 %569 }
 0x198   : > { %v571_v1 = vrot.slane %v570_v46, 4 }
 0x19a   : > { %v572_v2 = vadd.f32 %v571_v1, %v570_v46 }
 0x19c   : > { %v573_v3 = vrot.slane %v572_v2, 2 }
 0x19e   : > { %v574_v4 = vadd.f32 %v573_v3, %v572_v2 }
 0x1a0   : > { %v575_v5 = vrot.slane %v574_v4, 1 }
 0x1a2   : > { %v576_v7 = vadd.f32 %v575_v5, %v574_v4 }
 0x1a4   : > { %757 = vpush %v576_v7 }
 0x1d5   : > { %s758_s14 = spop %757  ;;  %585 = sbr.rel (%p672_p5) target bundleno = 482 (0x1e2), region = 40 }
 0x1d6   : > { %v578_v0 = vstv %s758_s14 }
 0x1d7   : > { %v579_v8 = vadd.f32 %v578_v0, %v520_v54 }
 0x1d9   : > { %581 = vst.msk [vmem:[#allocation2] sm:$0x1] %vm580_vm4, %v579_v8 }
 0x1e0   : > { %v586_v9 = vld [vmem:[#allocation2] sm:$0x1] }
 0x1e1   : > { %587 = vst.msk [vmem:[#allocation3] sm:$0x1] %vm580_vm4, %v586_v9 }
 0x1e2 PF: > { %p763_p6 = scmp.eq.s32.totalorder %s839_s13, 2  ;;  %s812_s15 = smov [#allocation3]  }
 0x1e3   : > { %s595_s16 = sshll.u32 %s812_s15, 4  ;;  %s596_s16 = int_to_ptr.vmem [resolvable:$true] %s595_s16 }
 0x1e4   : > { %s775_s17 = scalar_lea.vmem %s596_s16, 16  ;;  %s781_s18 = scalar_lea.vmem %s596_s16, 32 }
 0x1e5   : > { %p776_p7 = scmp.ne.s32.totalorder %s596_s16, %s775_s17  ;;  %p782_p10 = scmp.lt.s32.totalorder %s596_s16, %s596_s16 }
 0x1e6   : > { %p783_p11 = scmp.lt.s32.totalorder %s781_s18, %s775_s17 }
 0x1e7   : > { %p777_p8 = pnand %p776_p7, %p763_p6 }
 0x1e8   : > { %p784_p12 = por %p783_p11, %p782_p10 }
 0x1e9   : > { %p778_p9 = pneg %p777_p8 }
 0x1eb   : > { %p785_p13 = pnand %p784_p12, %p778_p9 }
 0x1ed   : > { %788 = shalt.err (!%p785_p13)
}
 0x1ee   : > { %760 = dma.vmem_to_hbm [thread:$0]  (%p763_p6), %s596_s16, 16, %s1052_s3, [#allocation4]  }
 0x1ef   : > { %804 = dma.done.wait (%p763_p6), [#allocation4], 16  }
 0x1f0   : > { %806 = vsyncadd (%p763_p6), [#allocation4], 4294967280 }
 0x1f1 PF: > { %s14_s12 = sadd.s32 1, %s809_s12  }
 0x1f2   : > { %p11_p0 = scmp.ge.s32.totalorder %s14_s12, 5  }
 0x1f4   :  { %13 = sbr.rel (!%p11_p0) target bundleno = 1 (0x1), region = 70 }
 0x1f9   :  { %608 = vsyncpa [#allocation4], 1 }
 0x1fa   :  { %610 = vsyncpa [#allocation4 + $0x1], 1 }

</bundles_post_ra>
